<compile_context>
chip_gen: v7x
topology: tpu7x:2x2x1
jax: 0.10.0
libtpu: 0.0.40
codegen_flags: <defaults>
</compile_context>

<pallas_src>
import jax
import jax.numpy as jnp
from jax.experimental import pallas as pl
from jax.experimental.pallas import tpu as pltpu


_LANES = 128
_SUBLANES = 8
_DEFAULT_BLOCK_ROWS = 2048   # 2048 rows * 128 lanes * 4 B = 1 MiB per f32 block


def _mse_with_logits_kernel(logits_ref, target_ref, out_ref):
    # Storage dtype (f32 or bf16) is whatever the caller passed; compute in f32.
    x = logits_ref[...].astype(jnp.float32)
    t = target_ref[...].astype(jnp.float32)

    conf = jax.nn.sigmoid(x)                       # exp -> EUP slot (free-ish)
    conf = jnp.clip(conf, 0.0001, 1.0 - 0.0001)

    diff = t - conf
    loss_true = 5.0 * (diff * diff)                # applies only where t == 1
    loss_false = conf * conf                       # applies only where t == 0

    zero = jnp.zeros_like(conf)
    loss = jnp.where(t == 0.0, loss_false,
                     jnp.where(t == 1.0, loss_true, zero))
    out_ref[...] = loss.astype(out_ref.dtype)


def _choose_block_rows(rows, requested):
    """Sublane-aligned row block; prefer >=2 grid steps when there is enough work."""
    if rows <= _SUBLANES:
        return rows                      # full extent — single (possibly tiny) tile
    br = min(requested, rows)
    br -= br % _SUBLANES                 # keep the (8, 128) tiling constraint
    br = max(br, _SUBLANES)
    # >=2 parallel grid steps lets v7x shard the work across its 2 TensorCores.
    if pl.cdiv(rows, br) < 2 and rows >= 2 * _SUBLANES:
        half = pl.cdiv(rows, 2)
        br = max(_SUBLANES, half - half % _SUBLANES)
    return br


def mse_with_logits_loss(logits, target, *, block_rows=_DEFAULT_BLOCK_ROWS,
                         out_dtype=jnp.float32):
    """Elementwise YOLOv1 confidence MSE-with-logits loss via a Pallas kernel."""
    assert logits.shape == target.shape, "logits and target must have same shape"
    orig_shape = logits.shape
    n = 1
    for d in orig_shape:
        n *= d
    if n == 0:
        return jnp.zeros(orig_shape, dtype=out_dtype)

    # Flatten (no upcast here — the kernel handles the f32 cast in-registers).
    lf = jnp.ravel(logits)
    tf = jnp.ravel(target)

    # Pad only when the flat size is not lane-aligned (static Python check).
    # The common NCHW case hits the no-pad path and avoids an extra HBM pass;
    # padded tail values are sliced off after the kernel, so any pad value works.
    rem = n % _LANES
    if rem != 0:
        pad = _LANES - rem
        lf = jnp.pad(lf, (0, pad))
        tf = jnp.pad(tf, (0, pad))

    rows = lf.shape[0] // _LANES
    lf2 = lf.reshape(rows, _LANES)
    tf2 = tf.reshape(rows, _LANES)

    br = _choose_block_rows(rows, block_rows)
    grid = (pl.cdiv(rows, br),)          # last block may be partial; Pallas clips it
    blk = pl.BlockSpec((br, _LANES), lambda i: (i, 0))
    # TODO(synk): if a profile ever shows exposed input DMA, try
    # pipeline_mode=pl.Buffered(3) on the two input BlockSpecs.

    # Double-buffered VMEM budget: 3 arrays x 2 buffers x one block (worst-case
    # f32).  Only raise the scoped-VMEM limit when the default could be tight
    # (v5e defaults to 16 MiB scoped VMEM).
    block_bytes = br * _LANES * 4
    need = 3 * 2 * block_bytes
    cp_kwargs = dict(dimension_semantics=("parallel",))
    if need > 12 * 1024 * 1024:
        cp_kwargs["vmem_limit_bytes"] = int(need * 3 // 2)

    out = pl.pallas_call(
        _mse_with_logits_kernel,
        out_shape=jax.ShapeDtypeStruct((rows, _LANES), out_dtype),
        grid=grid,
        in_specs=[blk, blk],
        out_specs=blk,
        compiler_params=pltpu.CompilerParams(**cp_kwargs),
    )(lf2, tf2)

    if rem != 0:
        return out.reshape(-1)[:n].reshape(orig_shape)
    return out.reshape(orig_shape)


def _reference(logits, target):
    conf = jnp.clip(jax.nn.sigmoid(logits.astype(jnp.float32)), 0.0001, 1.0 - 0.0001)
    t = target.astype(jnp.float32)
    ct = (t == 1.0).astype(jnp.float32)
    cf = (t == 0.0).astype(jnp.float32)
    return cf * conf ** 2 + 5.0 * ct * (t - conf) ** 2


if __name__ == "__main__":
    key = jax.random.PRNGKey(0)
    k1, k2 = jax.random.split(key)

    # YOLOv1-style confidence map: (batch, anchors, H, W) in NCHW.
    shape = (2, 4, 16, 16)
    logits = jax.random.normal(k1, shape, dtype=jnp.float32)
    # Targets in {0, 1} (objectness labels) plus one non-{0,1} value to
    # exercise the "neither mask" branch.
    target = (jax.random.uniform(k2, shape) > 0.7).astype(jnp.float32)
    target = target.at[0, 0, 0, 0].set(0.5)

    loss = mse_with_logits_loss(logits, target)
    jax.block_until_ready(loss)
    ref = _reference(logits, target)
    assert loss.shape == shape
    assert jnp.allclose(loss, ref, atol=1e-6, rtol=1e-5), "mismatch vs reference"

    # Non-lane-aligned shape exercises the padded / partial-tile path.
    shape2 = (3, 5, 7)
    l2 = jax.random.normal(k1, shape2, dtype=jnp.float32)
    t2 = (jax.random.uniform(k2, shape2) > 0.5).astype(jnp.float32)
    loss2 = mse_with_logits_loss(l2, t2)
    jax.block_until_ready(loss2)
    assert loss2.shape == shape2
    assert jnp.allclose(loss2, _reference(l2, t2), atol=1e-6, rtol=1e-5), \
        "mismatch vs reference (unaligned tail)"

    # bf16 logits stay bf16 in HBM (half the read traffic); compute is still f32.
    loss3 = mse_with_logits_loss(logits.astype(jnp.bfloat16), target)
    jax.block_until_ready(loss3)
    assert jnp.allclose(loss3, _reference(logits.astype(jnp.bfloat16), target),
                        atol=1e-6, rtol=1e-5), "mismatch vs reference (bf16)"

    print("KERNEL_OK")
</pallas_src>

<mosaic_0001>
module attributes {stable_mosaic.version = 11 : i64} {
  func.func @_mse_with_logits_kernel(%arg0: i32, %arg1: memref<8x128xf32, #tpu.memory_space<vmem>>, %arg2: memref<8x128xf32, #tpu.memory_space<vmem>>, %arg3: memref<8x128xf32, #tpu.memory_space<vmem>>) attributes {dimension_semantics = [#tpu.dimension_semantics<parallel>], iteration_bounds = array<i64: 2>, scalar_prefetch = 0 : i64, scratch_operands = 0 : i64, tpu.core_type = #tpu.core_type<tc>, window_params = [{transform_indices = @transform_0, window_bounds = array<i64: 8, 128>}, {transform_indices = @transform_1, window_bounds = array<i64: 8, 128>}, {transform_indices = @transform_2, window_bounds = array<i64: 8, 128>}]} {
    %c0 = arith.constant 0 : index
    %c0_0 = arith.constant 0 : index
    %0 = vector.load %arg1[%c0, %c0_0] : memref<8x128xf32, #tpu.memory_space<vmem>>, vector<8x128xf32>
    %c0_1 = arith.constant 0 : index
    %c0_2 = arith.constant 0 : index
    %1 = vector.load %arg2[%c0_1, %c0_2] : memref<8x128xf32, #tpu.memory_space<vmem>>, vector<8x128xf32>
    %2 = arith.negf %0 : vector<8x128xf32>
    %3 = math.exp %2 : vector<8x128xf32>
    %cst = arith.constant 1.000000e+00 : f32
    %4 = vector.broadcast %cst : f32 to vector<8x128xf32>
    %5 = arith.addf %4, %3 : vector<8x128xf32>
    %6 = arith.divf %4, %5 : vector<8x128xf32>
    %cst_3 = arith.constant 9.99999974E-5 : f32
    %cst_4 = arith.constant 0.999899983 : f32
    %7 = vector.broadcast %cst_3 : f32 to vector<8x128xf32>
    %8 = arith.maximumf %7, %6 : vector<8x128xf32>
    %9 = vector.broadcast %cst_4 : f32 to vector<8x128xf32>
    %10 = arith.minimumf %9, %8 : vector<8x128xf32>
    %11 = arith.subf %1, %10 : vector<8x128xf32>
    %12 = arith.mulf %11, %11 : vector<8x128xf32>
    %cst_5 = arith.constant 5.000000e+00 : f32
    %13 = vector.broadcast %cst_5 : f32 to vector<8x128xf32>
    %14 = arith.mulf %13, %12 : vector<8x128xf32>
    %15 = arith.mulf %10, %10 : vector<8x128xf32>
    %cst_6 = arith.constant 0.000000e+00 : f32
    %16 = vector.broadcast %cst_6 : f32 to vector<8x128xf32>
    %cst_7 = arith.constant 0.000000e+00 : f32
    %17 = vector.broadcast %cst_7 : f32 to vector<8x128xf32>
    %18 = arith.cmpf oeq, %1, %17 : vector<8x128xf32>
    %cst_8 = arith.constant 1.000000e+00 : f32
    %19 = vector.broadcast %cst_8 : f32 to vector<8x128xf32>
    %20 = arith.cmpf oeq, %1, %19 : vector<8x128xf32>
    %21 = arith.select %20, %14, %16 : vector<8x128xi1>, vector<8x128xf32>
    %22 = arith.select %18, %15, %21 : vector<8x128xi1>, vector<8x128xf32>
    %c0_9 = arith.constant 0 : index
    %c0_10 = arith.constant 0 : index
    %23 = vector.load %arg3[%c0_9, %c0_10] : memref<8x128xf32, #tpu.memory_space<vmem>>, vector<8x128xf32>
    tpu.vector_store %arg3[%c0_9, %c0_10], %22 {strides = array<i32>} : memref<8x128xf32, #tpu.memory_space<vmem>>, vector<8x128xf32>,
    return
  }
  func.func @transform_0(%arg0: i32) -> (i32, i32) {
    %c0_i32 = arith.constant 0 : i32
    %c0_i32_0 = arith.constant 0 : i32
    return %arg0, %c0_i32 : i32, i32
  }
  func.func @transform_1(%arg0: i32) -> (i32, i32) {
    %c0_i32 = arith.constant 0 : i32
    %c0_i32_0 = arith.constant 0 : i32
    return %arg0, %c0_i32 : i32, i32
  }
  func.func @transform_2(%arg0: i32) -> (i32, i32) {
    %c0_i32 = arith.constant 0 : i32
    %c0_i32_0 = arith.constant 0 : i32
    return %arg0, %c0_i32 : i32, i32
  }
}

</mosaic_0001>

<bundles_post_ra>
// kernel: tpu_custom_call.1
= control target key start
LH: loop header
LB: loop body
LE: loop exit
PB: predicated region body
PF: predicated region fallthrough
CT: control target
= control target key end

     0   :  { %7 = vsyncpa [#allocation3], 0  ;;  %s757_s0 = inlined_call_operand.hbm [shape: f32[16,128], index: 0, kind: input, shape index: {}]   ;;  %s758_s1 = inlined_call_operand.hbm [shape: f32[16,128], index: 1, kind: input, shape index: {}]   ;;  %s759_s2 = inlined_call_operand.hbm [shape: f32[16,128], index: 2, kind: output, shape index: {}]  }
   0x1   :  { %9 = vsyncpa [#allocation3 + $0x1], 0 }
   0x2   :  { %10 = vsyncpa [#allocation6], 0 }
   0x3   :  { %12 = vsyncpa [#allocation6 + $0x1], 0 }
   0x4   :  { %13 = vsyncpa [#allocation4], 0 }
   0x5   :  { %15 = vsyncpa [#allocation4 + $0x1], 0  ;;  %s543_s9 = smov 0   ;;  %s545_s10 = smov 0  }
   0x6   :  { %s547_s11 = smov 0   ;;  %s549_s12 = smov 0  }
   0x7 LB: > { %s564_s13 = sadd.s32 4294967295, %s523_s12   ;;  %s322_s14 = sadd.s32 4294967294, %s523_s12   ;;  %s523_s12 = sphi %s549_s12, %s778_s12   ;;  %s519_s11 = sphi %s547_s11, %s777_s11   ;;  %s515_s10 = sphi %s545_s10, %s776_s10   ;;  %s511_s9 = sphi %s543_s9, %s775_s9  }
   0x8   : > { %s568_s15 = sadd.s32 1, %s523_s12   ;;  %s28_s16 = sadd.s32 1, %s519_s11 }
   0x9   : > { %s25_s17 = ssub.s32 %s523_s12, %s568_s15  ;;  %p35_p0 = scmp.ne.s32.totalorder %s519_s11, %s515_s10 }
   0xa   : > { %p26_p1 = scmp.eq.s32.totalorder %s25_s17, 0  ;;  %p36_p2 = scmp.eq.s32.totalorder %s523_s12, 0 }
   0xb   : > { %p41_p3 = scmp.ne.s32.totalorder %s515_s10, %s511_s9  ;;  %p42_p4 = scmp.eq.s32.totalorder %s564_s13, 0 }
   0xc   : > { %s580_s18 = scalar_select %p26_p1, %s519_s11, %s28_s16  }
   0xd   : > { %p582_p5 = por %p36_p2, %p35_p0  ;;  %p586_p6 = por %p42_p4, %p41_p3 }
   0xe   : > { %p91_p7 = scmp.eq.s32.totalorder %s564_s13, 1  ;;  %p97_p8 = scmp.eq.s32.totalorder %s322_s14, 1 }
   0xf   : > { %s763_s20 = scalar_select %p586_p6, 1, 0 }
  0x10   : > { %p355_p10 = scmp.lt.s32.totalorder %s523_s12, 2  ;;  %p593_p11 = por %p91_p7, %p35_p0 }
  0x11   : > { %p597_p12 = por %p97_p8, %p41_p3  ;;  %s602_s23 = sand.u32 1, %s519_s11  }
  0x12   : > { %s764_s21 = scalar_select %p593_p11, 1, 0 }
  0x13   : > { %s765_s22 = scalar_select %p597_p12, 1, 0 }
  0x14   : > { %s326_s24 = sshll.u32 %s523_s12, 7  ;;  %s325_s25 = sshll.u32 %s602_s23, 3 }
  0x15   : > { %s611_s28 = scalar_lea.hbm %s757_s0, %s326_s24  ;;  %s121_s29 = scalar_lea.vmem [#allocation2], %s325_s25 }
  0x16   : > { %s128_s30 = sshll.u32 %s121_s29, 4  ;;  %p617_p13 = pnand %p355_p10, %p582_p5  ;;  %s621_s30 = int_to_ptr.vmem [resolvable:$true] %s128_s30 }
  0x17   : > { %s118_s4 = scalar_lea.sflag [#allocation3], %s602_s23  ;;  %s393_s5 = scalar_lea.hbm %s611_s28, 128 }
  0x18   : > { %p394_p2 = scmp.ne.s32.totalorder %s611_s28, %s393_s5  ;;  %p395_p3 = pneg %p617_p13 }
  0x19   : > { %s398_s8 = scalar_lea.hbm %s757_s0, 256  ;;  %p399_p5 = scmp.lt.u32.totalorder %s611_s28, %s757_s0 }
  0x1a   : > { %p396_p4 = pnand %p395_p3, %p394_p2  ;;  %p400_p8 = scmp.lt.u32.totalorder %s398_s8, %s393_s5 }
  0x1b   : > { %p402_p9 = scmp.lt.u32.totalorder %s393_s5, %s611_s28 }
  0x1c   : > { %p397_p7 = pneg %p396_p4  ;;  %p401_p10 = por %p400_p8, %p399_p5 }
  0x1e   : > { %p403_p0 = por %p402_p9, %p401_p10 }
  0x20   : > { %p404_p1 = pnand %p403_p0, %p397_p7 }
  0x22   : > { %407 = shalt.err (!%p404_p1)
}
  0x23   : > { %s408_s17 = scalar_lea.vmem %s621_s30, 128  ;;  %s525_s19 = smov [#allocation2]  }
  0x24   : > { %p409_p2 = scmp.ne.s32.totalorder %s621_s30, %s408_s17  ;;  %s413_s26 = sshll.u32 %s525_s19, 4  ;;  %s414_s26 = int_to_ptr.vmem [resolvable:$false] %s413_s26 }
  0x25   : > { %s415_s27 = scalar_lea.vmem %s414_s26, 256  ;;  %p416_p11 = scmp.lt.s32.totalorder %s621_s30, %s414_s26 }
  0x26   : > { %p411_p4 = pnand %p409_p2, %p395_p3  ;;  %p417_p5 = scmp.lt.s32.totalorder %s415_s27, %s408_s17 }
  0x28   : > { %p412_p12 = pneg %p411_p4  ;;  %p418_p8 = por %p417_p5, %p416_p11 }
  0x2a   : > { %p419_p9 = pnand %p418_p8, %p412_p12 }
  0x2c   : > { %422 = shalt.err (!%p419_p9)
}
  0x2d   : > { %347 = dma.hbm_to_vmem [thread:$0]  (!%p617_p13), %s611_s28, 128, %s621_s30, %s118_s4  }
  0x2e   : > { %p767_p0 = scmp.lt.s32.totalorder %s523_s12, 3  ;;  %p768_p1 = scmp.ge.s32.totalorder %s523_s12, 1 }
  0x2f   : > { %s664_s7 = scalar_lea.hbm %s758_s1, %s326_s24  ;;  %s139_s8 = scalar_lea.vmem [#allocation5], %s325_s25 }
  0x30   : > { %p655_p7 = pnand %p768_p1, %p767_p0  ;;  %s146_s14 = sshll.u32 %s139_s8, 4  ;;  %s147_s14 = int_to_ptr.vmem [resolvable:$true] %s146_s14 }
  0x31   : > { %s136_s28 = scalar_lea.sflag [#allocation6], %s602_s23  ;;  %s423_s30 = scalar_lea.hbm %s664_s7, 128 }
  0x32   : > { %s769_s29 = scalar_select %p655_p7, 1, 0 }
  0x33   : > { %p424_p11 = scmp.ne.s32.totalorder %s664_s7, %s423_s30  ;;  %s428_s24 = scalar_lea.hbm %s758_s1, 256 }
  0x34   : > { %p429_p2 = scmp.lt.u32.totalorder %s664_s7, %s758_s1  ;;  %p430_p4 = scmp.lt.u32.totalorder %s428_s24, %s423_s30 }
  0x35   : > { %p426_p12 = pnand %p424_p11, %p395_p3  ;;  %p432_p8 = scmp.lt.u32.totalorder %s423_s30, %s664_s7 }
  0x36   : > { %p431_p5 = por %p430_p4, %p429_p2 }
  0x37   : > { %p427_p10 = pneg %p426_p12 }
  0x38   : > { %p433_p9 = por %p432_p8, %p431_p5 }
  0x3a   : > { %p434_p0 = pnand %p433_p9, %p427_p10 }
  0x3c   : > { %437 = shalt.err (!%p434_p0)
}
  0x3d   : > { %s438_s23 = scalar_lea.vmem %s147_s14, 128  ;;  %s526_s25 = smov [#allocation5]  }
  0x3e   : > { %p439_p1 = scmp.ne.s32.totalorder %s147_s14, %s438_s23  ;;  %s443_s26 = sshll.u32 %s526_s25, 4  ;;  %s444_s26 = int_to_ptr.vmem [resolvable:$false] %s443_s26 }
  0x3f   : > { %s445_s27 = scalar_lea.vmem %s444_s26, 256  ;;  %p446_p6 = scmp.lt.s32.totalorder %s147_s14, %s444_s26 }
  0x40   : > { %p441_p11 = pnand %p439_p1, %p395_p3  ;;  %p447_p7 = scmp.lt.s32.totalorder %s445_s27, %s438_s23 }
  0x42   : > { %p442_p12 = pneg %p441_p11  ;;  %p448_p2 = por %p447_p7, %p446_p6 }
  0x44   : > { %p449_p4 = pnand %p448_p2, %p442_p12 }
  0x46   : > { %452 = shalt.err (!%p449_p4)
}
  0x47   : > { %350 = dma.hbm_to_vmem [thread:$0]  (!%p617_p13), %s664_s7, 128, %s147_s14, %s136_s28  }
  0x48   : > { %p770_p10 = scmp.ne.s32.totalorder %s769_s29, 0 }
  0x49   : > { %s691_s5 = sand.u32 (!%p770_p10), 1, %s515_s10   ;;  %p771_p6 = scmp.ne.s32.totalorder (!%p770_p10), %s763_s20, 0 }
  0x4a   : > { %155 = sbr.rel (%p770_p10) target bundleno = 137 (0x89), region = 28  ;;  %s694_s6 = sshll.u32 (!%p770_p10), %s691_s5, 3 }
  0x4b   : > { %s158_s8 = scalar_lea.sflag (!%p770_p10), [#allocation3], %s691_s5  ;;  %s161_s30 = scalar_lea.vmem (!%p770_p10), [#allocation2], %s694_s6 }
  0x51   : > { %498 = dma.done.wait (%p771_p6), %s158_s8, 128  }
  0x52   : > { %500 = vsyncadd (%p771_p6), %s158_s8, 4294967168  ;;  %s167_s3 = scalar_lea.sflag [#allocation6], %s691_s5  ;;  %s170_s29 = scalar_lea.vmem [#allocation5], %s694_s6 }
  0x53   : > { %502 = dma.done.wait (%p771_p6), %s167_s3, 128  }
  0x54   : > { %504 = vsyncadd (%p771_p6), %s167_s3, 4294967168  ;;  %v196_v0 = vld [vmem:[%s161_s30] sm:$0xff]  ;;  %v197_v6 = vld [vmem:[%s170_s29] sm:$0xff]  ;;  %s195_s20 = scalar_lea.vmem [#allocation7], %s694_s6  ;;  %s335_s14 = sshll.u32 %s564_s13, 7 }
  0x55   : > { %v333_v1 = vmul.f32 -1.442695, %v196_v0  ;;  %vm211_vm0 = vcmp.eq.f32.partialorder %v197_v6, 1.0  ;;  %s229_s7 = sshll.u32 %s195_s20, 4  ;;  %vm210_vm1 = vcmp.eq.f32.partialorder %v197_v6, 0.0  ;;  %s715_s16 = scalar_lea.hbm %s759_s2, %s335_s14  ;;  %s710_s7 = int_to_ptr.vmem [resolvable:$true] %s229_s7 }
  0x56   : > { %s216_s24 = scalar_lea.sflag [#allocation4], %s691_s5  ;;  %s453_s17 = scalar_lea.vmem %s710_s7, 128 }
  0x57   : > { %389 = vpow2.f32 %v333_v1  ;;  %p454_p13 = scmp.ne.s32.totalorder %s710_s7, %s453_s17  ;;  %p772_p3 = scmp.ne.s32.totalorder %s764_s21, 0 }
  0x58   : > { %s527_s13 = smov [#allocation7]  }
  0x59   : > { %p455_p7 = pnand %p454_p13, %p772_p3  ;;  %s457_s19 = sshll.u32 %s527_s13, 4  ;;  %s458_s19 = int_to_ptr.vmem [resolvable:$false] %s457_s19 }
  0x5a   : > { %s459_s23 = scalar_lea.vmem %s458_s19, 256  ;;  %p460_p8 = scmp.lt.s32.totalorder %s710_s7, %s458_s19 }
  0x5b   : > { %p456_p5 = pneg %p455_p7  ;;  %p461_p9 = scmp.lt.s32.totalorder %s459_s23, %s453_s17 }
  0x5d   : > { %p462_p0 = por %p461_p9, %p460_p8 }
  0x5f   : > { %p463_p1 = pnand %p462_p0, %p456_p5 }
  0x61   : > { %v390_v2 = vpop.eup %389 }
  0x62   : > { %v201_v3 = vadd.f32 1.0, %v390_v2 }
  0x64   : > { %391 = vrcp.f32 %v201_v3 }
  0x6e   : > { %v392_v4 = vpop.eup %391 }
  0x6f   : > { %v204_v5 = vmax.f32 %v392_v4, 0.0001 }
  0x71   : > { %v205_v7 = vmin.f32 %v204_v5, 0.9999 }
  0x73   : > { %v206_v8 = vsub.f32 %v197_v6, %v205_v7  ;;  %v209_v10 = vmul.f32 %v205_v7, %v205_v7 }
  0x75   : > { %v207_v9 = vmul.f32 %v206_v8, %v206_v8 }
  0x77   : > { %v208_v11 = vmul.f32 5.0, %v207_v9 }
  0x79   : > { %v212_v12 = vsel %vm211_vm0, %v208_v11, 0.0 }
  0x7a   : > { %v213_v13 = vsel %vm210_vm1, %v209_v10, %v212_v12 }
  0x7b   : > { %214 = vst [vmem:[%s195_s20] sm:$0xff] %v213_v13 }
  0x7c   : > { %466 = shalt.err (!%p463_p1)
}
  0x7d   : > { %s467_s25 = scalar_lea.hbm %s715_s16, 128  ;;  %s471_s5 = scalar_lea.hbm %s759_s2, 256 }
  0x7e   : > { %p468_p11 = scmp.ne.s32.totalorder %s715_s16, %s467_s25  ;;  %p472_p4 = scmp.lt.u32.totalorder %s715_s16, %s759_s2 }
  0x7f   : > { %p473_p10 = scmp.lt.u32.totalorder %s471_s5, %s467_s25  ;;  %p475_p13 = scmp.lt.u32.totalorder %s467_s25, %s715_s16 }
  0x80   : > { %p469_p12 = pnand %p468_p11, %p772_p3 }
  0x81   : > { %p474_p6 = por %p473_p10, %p472_p4 }
  0x82   : > { %p470_p2 = pneg %p469_p12 }
  0x83   : > { %p476_p7 = por %p475_p13, %p474_p6 }
  0x85   : > { %p477_p5 = pnand %p476_p7, %p470_p2 }
  0x87   : > { %480 = shalt.err (!%p477_p5)
}
  0x88   : > { %342 = dma.vmem_to_hbm [thread:$0]  (%p772_p3), %s710_s7, 128, %s715_s16, %s216_s24  }
  0x89 PF: > { %s241_s30 = sand.u32 1, %s511_s9   ;;  %p773_p8 = scmp.ne.s32.totalorder %s765_s22, 0 }
  0x8a   : > { %p774_p9 = scmp.ge.s32.totalorder %s523_s12, 2  ;;  %s242_s3 = scalar_lea.sflag [#allocation4], %s241_s30 }
  0x8c   : > { %p352_p0 = pnand %p774_p9, %p773_p8 }
  0x8e   : > { %506 = dma.done.wait (!%p352_p0), %s242_s3, 128  }
  0x8f   : > { %508 = vsyncadd (!%p352_p0), %s242_s3, 4294967168  ;;  %p18_p1 = scmp.ge.s32.totalorder %s568_s15, 4   ;;  %s775_s9 = smov %s515_s10 }
  0x90   : > { %s776_s10 = smov %s519_s11  ;;  %s777_s11 = smov %s580_s18 }
  0x91   : > { %s778_s12 = smov %s568_s15  ;;  %20 = sbr.rel (!%p18_p1) target bundleno = 7 (0x7), region = 86 }
  0x98   :  { %247 = vsyncpa [#allocation3], 1 }
  0x99   :  { %249 = vsyncpa [#allocation3 + $0x1], 1 }
  0x9a   :  { %250 = vsyncpa [#allocation6], 1 }
  0x9b   :  { %252 = vsyncpa [#allocation6 + $0x1], 1 }
  0x9c   :  { %253 = vsyncpa [#allocation4], 1 }
  0x9d   :  { %255 = vsyncpa [#allocation4 + $0x1], 1 }

</bundles_post_ra>
